<compile_context>
chip_gen: v6e
topology: v6e:2x2x1
jax: 0.10.0
libtpu: 0.0.40
codegen_flags: <defaults>
</compile_context>

<pallas_src>
import functools

import jax
import jax.numpy as jnp
from jax.experimental import pallas as pl
from jax.experimental.pallas import tpu as pltpu


def _sigmoid(z):
    # exp and the approximate reciprocal both ride the EUP slot (VALU stays clear).
    return pl.reciprocal(1.0 + jnp.exp(-z), approx=True)


def _srnn_kernel(xb_ref, wx_ref, bx_ref,
                 w1_ref, b1_ref, w2_ref, b2_ref, w3_ref, b3_ref,
                 w4_ref, b4_ref, w5_ref, b5_ref,
                 wo_ref, bo_ref,
                 out_ref, hid_ref,
                 *, T, B, shift):
    xb = xb_ref[...]                                   # (T*B, I): all timesteps at once

    # ---- batched x-only compute (independent of the hidden state) --------
    lin_x = jnp.dot(xb, wx_ref[...], preferred_element_type=jnp.float32) + bx_ref[...]
    a = jnp.maximum(jnp.dot(xb, w1_ref[...], preferred_element_type=jnp.float32) + b1_ref[...], 0.0)
    a = jnp.maximum(jnp.dot(a, w2_ref[...], preferred_element_type=jnp.float32) + b2_ref[...], 0.0)
    a = jnp.maximum(jnp.dot(a, w3_ref[...], preferred_element_type=jnp.float32) + b3_ref[...], 0.0)
    a = jnp.maximum(jnp.dot(a, w4_ref[...], preferred_element_type=jnp.float32) + b4_ref[...], 0.0)
    fx = _sigmoid(jnp.dot(a, w5_ref[...], preferred_element_type=jnp.float32) + b5_ref[...])
    b_all = fx * _sigmoid(lin_x)                       # (T*B, H)

    # ---- serial recurrence: VPU + XLU only (no MXU on the critical path) --
    H = hid_ref.shape[1]
    h = jnp.zeros((B, H), jnp.float32)                 # hidden = init_hidden(batch)
    for t in range(T):                                 # T is tiny & static -> fully unrolled
        b_t = b_all[t * B:(t + 1) * B, :]              # sublane-aligned static slice
        # pre_hidden = torch.roll(hidden, shift, -1): XLU lane rotate
        h = jnp.maximum(pltpu.roll(h, shift, axis=1) + b_t, 0.0)

    hid_ref[...] = h
    # output = sigmoid(self.h2o(hidden)); wo/bo are zero-padded to 128 lanes so
    # the store is lane-dense — the wrapper slices out column 0.
    out_ref[...] = _sigmoid(
        jnp.dot(h, wo_ref[...], preferred_element_type=jnp.float32) + bo_ref[...])


def _pad2(a, rows, cols):
    return jnp.pad(a, ((0, rows - a.shape[0]), (0, cols - a.shape[1])))


def srnn_forward(x, params, shift=1):
    """x: (B, T, I) float32. Returns (output (B, 1), hidden (B, H))."""
    B, T, I = x.shape
    H = params["wx"].shape[1]
    LP = 128   # lane-dense padding for the MLP inner dims (100, 50) and the h2o output

    # time-major and flattened over (T, B): the MLP runs once over all rows.
    xb = jnp.transpose(x, (1, 0, 2)).reshape(T * B, I)

    # Zero-pad MLP / h2o weights so every activation's last dim is 128.
    w1 = _pad2(params["w1"], I, LP);   b1 = _pad2(params["b1"], 1, LP)
    w2 = _pad2(params["w2"], LP, LP);  b2 = _pad2(params["b2"], 1, LP)
    w3 = _pad2(params["w3"], LP, LP);  b3 = _pad2(params["b3"], 1, LP)
    w4 = _pad2(params["w4"], LP, LP);  b4 = _pad2(params["b4"], 1, LP)
    w5 = _pad2(params["w5"], LP, H);   b5 = params["b5"]
    wo = _pad2(params["wo"], H, LP);   bo = _pad2(params["bo"], 1, LP)

    # Single invocation, no grid: everything (~0.4 MiB) lives in VMEM.
    out_pad, hidden = pl.pallas_call(
        functools.partial(_srnn_kernel, T=T, B=B, shift=shift),
        out_shape=(jax.ShapeDtypeStruct((B, LP), jnp.float32),   # col 0 is the real output
                   jax.ShapeDtypeStruct((B, H), jnp.float32)),
    )(xb, params["wx"], params["bx"], w1, b1, w2, b2, w3, b3, w4, b4, w5, b5, wo, bo)

    return out_pad[:, :1], hidden


def srnn_reference(x, params, shift=1):
    """Pure-JAX reference mirroring the PyTorch forward."""
    B = x.shape[0]
    H = params["wx"].shape[1]
    h = jnp.zeros((B, H), jnp.float32)
    xt = jnp.transpose(x, (1, 0, 2))
    for t in range(xt.shape[0]):
        xs = xt[t]
        pre = jnp.roll(h, shift, axis=-1)
        lx = xs @ params["wx"] + params["bx"]
        a = jax.nn.relu(xs @ params["w1"] + params["b1"])
        a = jax.nn.relu(a @ params["w2"] + params["b2"])
        a = jax.nn.relu(a @ params["w3"] + params["b3"])
        a = jax.nn.relu(a @ params["w4"] + params["b4"])
        fx = jax.nn.sigmoid(a @ params["w5"] + params["b5"])
        h = jax.nn.relu(pre + fx * jax.nn.sigmoid(lx))
    out = jax.nn.sigmoid(h @ params["wo"] + params["bo"])
    return out, h


def init_params(key, input_size, hidden_size):
    """Deterministic init mimicking nn.Linear (uniform ±1/sqrt(fan_in)).
    Weights stored pre-transposed as (in, out); biases as (1, out)."""
    dims = [
        ("wx", "bx", input_size, hidden_size),   # linearX
        ("w1", "b1", input_size, 100),           # layerMLP[0]
        ("w2", "b2", 100, 100),                  # layerMLP[2]
        ("w3", "b3", 100, 100),                  # layerMLP[4]
        ("w4", "b4", 100, 50),                   # layerMLP[6]
        ("w5", "b5", 50, hidden_size),           # layerMLP[8]
        ("wo", "bo", hidden_size, 1),            # h2o
    ]
    params = {}
    keys = jax.random.split(key, 2 * len(dims))
    for n, (wn, bn, fin, fout) in enumerate(dims):
        bound = 1.0 / (fin ** 0.5)
        params[wn] = jax.random.uniform(keys[2 * n], (fin, fout), jnp.float32, -bound, bound)
        params[bn] = jax.random.uniform(keys[2 * n + 1], (1, fout), jnp.float32, -bound, bound)
    return params


if __name__ == "__main__":
    B, T, I, H = 8, 6, 16, 128
    SHIFT = 1

    key = jax.random.PRNGKey(0)
    kx, kp = jax.random.split(key)
    x = jax.random.normal(kx, (B, T, I), jnp.float32)
    params = init_params(kp, I, H)

    out, hidden = srnn_forward(x, params, shift=SHIFT)
    jax.block_until_ready((out, hidden))

    out_ref, hid_ref = srnn_reference(x, params, shift=SHIFT)
    assert out.shape == (B, 1) and hidden.shape == (B, H)
    assert jnp.allclose(out, out_ref, atol=1e-2, rtol=1e-2)
    assert jnp.allclose(hidden, hid_ref, atol=1e-2, rtol=1e-2)

    print("KERNEL_OK")
</pallas_src>

<mosaic_0001>
module attributes {stable_mosaic.version = 11 : i64} {
  func.func @_srnn_kernel(%arg0: memref<48x16xf32, #tpu.memory_space<vmem>>, %arg1: memref<16x128xf32, #tpu.memory_space<vmem>>, %arg2: memref<1x128xf32, #tpu.memory_space<vmem>>, %arg3: memref<16x128xf32, #tpu.memory_space<vmem>>, %arg4: memref<1x128xf32, #tpu.memory_space<vmem>>, %arg5: memref<128x128xf32, #tpu.memory_space<vmem>>, %arg6: memref<1x128xf32, #tpu.memory_space<vmem>>, %arg7: memref<128x128xf32, #tpu.memory_space<vmem>>, %arg8: memref<1x128xf32, #tpu.memory_space<vmem>>, %arg9: memref<128x128xf32, #tpu.memory_space<vmem>>, %arg10: memref<1x128xf32, #tpu.memory_space<vmem>>, %arg11: memref<128x128xf32, #tpu.memory_space<vmem>>, %arg12: memref<1x128xf32, #tpu.memory_space<vmem>>, %arg13: memref<128x128xf32, #tpu.memory_space<vmem>>, %arg14: memref<1x128xf32, #tpu.memory_space<vmem>>, %arg15: memref<8x128xf32, #tpu.memory_space<vmem>>, %arg16: memref<8x128xf32, #tpu.memory_space<vmem>>) attributes {dimension_semantics = [], scalar_prefetch = 0 : i64, scratch_operands = 0 : i64, tpu.core_type = #tpu.core_type<tc>} {
    %c0 = arith.constant 0 : index
    %c0_0 = arith.constant 0 : index
    %0 = vector.load %arg0[%c0, %c0_0] : memref<48x16xf32, #tpu.memory_space<vmem>>, vector<48x16xf32>
    %c0_1 = arith.constant 0 : index
    %c0_2 = arith.constant 0 : index
    %1 = vector.load %arg1[%c0_1, %c0_2] : memref<16x128xf32, #tpu.memory_space<vmem>>, vector<16x128xf32>
    %cst = arith.constant dense<0.000000e+00> : vector<48x128xf32>
    %2 = tpu.matmul %0, %1, %cst {dimension_numbers = #tpu.dot_dimension_numbers<[1], [0], [0], [1], [0, 0, 1, 1], [], []>} : vector<48x16xf32>, vector<16x128xf32>, vector<48x128xf32> -> vector<48x128xf32>
    %c0_3 = arith.constant 0 : index
    %c0_4 = arith.constant 0 : index
    %3 = vector.load %arg2[%c0_3, %c0_4] : memref<1x128xf32, #tpu.memory_space<vmem>>, vector<1x128xf32>
    %4 = vector.broadcast %3 : vector<1x128xf32> to vector<48x128xf32>
    %5 = arith.addf %2, %4 : vector<48x128xf32>
    %c0_5 = arith.constant 0 : index
    %c0_6 = arith.constant 0 : index
    %6 = vector.load %arg3[%c0_5, %c0_6] : memref<16x128xf32, #tpu.memory_space<vmem>>, vector<16x128xf32>
    %cst_7 = arith.constant dense<0.000000e+00> : vector<48x128xf32>
    %7 = tpu.matmul %0, %6, %cst_7 {dimension_numbers = #tpu.dot_dimension_numbers<[1], [0], [0], [1], [0, 0, 1, 1], [], []>} : vector<48x16xf32>, vector<16x128xf32>, vector<48x128xf32> -> vector<48x128xf32>
    %c0_8 = arith.constant 0 : index
    %c0_9 = arith.constant 0 : index
    %8 = vector.load %arg4[%c0_8, %c0_9] : memref<1x128xf32, #tpu.memory_space<vmem>>, vector<1x128xf32>
    %9 = vector.broadcast %8 : vector<1x128xf32> to vector<48x128xf32>
    %10 = arith.addf %7, %9 : vector<48x128xf32>
    %cst_10 = arith.constant 0.000000e+00 : f32
    %11 = vector.broadcast %cst_10 : f32 to vector<48x128xf32>
    %12 = arith.maximumf %10, %11 : vector<48x128xf32>
    %c0_11 = arith.constant 0 : index
    %c0_12 = arith.constant 0 : index
    %13 = vector.load %arg5[%c0_11, %c0_12] : memref<128x128xf32, #tpu.memory_space<vmem>>, vector<128x128xf32>
    %cst_13 = arith.constant dense<0.000000e+00> : vector<48x128xf32>
    %14 = tpu.matmul %12, %13, %cst_13 {dimension_numbers = #tpu.dot_dimension_numbers<[1], [0], [0], [1], [0, 0, 1, 1], [], []>} : vector<48x128xf32>, vector<128x128xf32>, vector<48x128xf32> -> vector<48x128xf32>
    %c0_14 = arith.constant 0 : index
    %c0_15 = arith.constant 0 : index
    %15 = vector.load %arg6[%c0_14, %c0_15] : memref<1x128xf32, #tpu.memory_space<vmem>>, vector<1x128xf32>
    %16 = vector.broadcast %15 : vector<1x128xf32> to vector<48x128xf32>
    %17 = arith.addf %14, %16 : vector<48x128xf32>
    %cst_16 = arith.constant 0.000000e+00 : f32
    %18 = vector.broadcast %cst_16 : f32 to vector<48x128xf32>
    %19 = arith.maximumf %17, %18 : vector<48x128xf32>
    %c0_17 = arith.constant 0 : index
    %c0_18 = arith.constant 0 : index
    %20 = vector.load %arg7[%c0_17, %c0_18] : memref<128x128xf32, #tpu.memory_space<vmem>>, vector<128x128xf32>
    %cst_19 = arith.constant dense<0.000000e+00> : vector<48x128xf32>
    %21 = tpu.matmul %19, %20, %cst_19 {dimension_numbers = #tpu.dot_dimension_numbers<[1], [0], [0], [1], [0, 0, 1, 1], [], []>} : vector<48x128xf32>, vector<128x128xf32>, vector<48x128xf32> -> vector<48x128xf32>
    %c0_20 = arith.constant 0 : index
    %c0_21 = arith.constant 0 : index
    %22 = vector.load %arg8[%c0_20, %c0_21] : memref<1x128xf32, #tpu.memory_space<vmem>>, vector<1x128xf32>
    %23 = vector.broadcast %22 : vector<1x128xf32> to vector<48x128xf32>
    %24 = arith.addf %21, %23 : vector<48x128xf32>
    %cst_22 = arith.constant 0.000000e+00 : f32
    %25 = vector.broadcast %cst_22 : f32 to vector<48x128xf32>
    %26 = arith.maximumf %24, %25 : vector<48x128xf32>
    %c0_23 = arith.constant 0 : index
    %c0_24 = arith.constant 0 : index
    %27 = vector.load %arg9[%c0_23, %c0_24] : memref<128x128xf32, #tpu.memory_space<vmem>>, vector<128x128xf32>
    %cst_25 = arith.constant dense<0.000000e+00> : vector<48x128xf32>
    %28 = tpu.matmul %26, %27, %cst_25 {dimension_numbers = #tpu.dot_dimension_numbers<[1], [0], [0], [1], [0, 0, 1, 1], [], []>} : vector<48x128xf32>, vector<128x128xf32>, vector<48x128xf32> -> vector<48x128xf32>
    %c0_26 = arith.constant 0 : index
    %c0_27 = arith.constant 0 : index
    %29 = vector.load %arg10[%c0_26, %c0_27] : memref<1x128xf32, #tpu.memory_space<vmem>>, vector<1x128xf32>
    %30 = vector.broadcast %29 : vector<1x128xf32> to vector<48x128xf32>
    %31 = arith.addf %28, %30 : vector<48x128xf32>
    %cst_28 = arith.constant 0.000000e+00 : f32
    %32 = vector.broadcast %cst_28 : f32 to vector<48x128xf32>
    %33 = arith.maximumf %31, %32 : vector<48x128xf32>
    %c0_29 = arith.constant 0 : index
    %c0_30 = arith.constant 0 : index
    %34 = vector.load %arg11[%c0_29, %c0_30] : memref<128x128xf32, #tpu.memory_space<vmem>>, vector<128x128xf32>
    %cst_31 = arith.constant dense<0.000000e+00> : vector<48x128xf32>
    %35 = tpu.matmul %33, %34, %cst_31 {dimension_numbers = #tpu.dot_dimension_numbers<[1], [0], [0], [1], [0, 0, 1, 1], [], []>} : vector<48x128xf32>, vector<128x128xf32>, vector<48x128xf32> -> vector<48x128xf32>
    %c0_32 = arith.constant 0 : index
    %c0_33 = arith.constant 0 : index
    %36 = vector.load %arg12[%c0_32, %c0_33] : memref<1x128xf32, #tpu.memory_space<vmem>>, vector<1x128xf32>
    %37 = vector.broadcast %36 : vector<1x128xf32> to vector<48x128xf32>
    %38 = arith.addf %35, %37 : vector<48x128xf32>
    %cst_34 = arith.constant 0.000000e+00 : f32
    %39 = vector.broadcast %cst_34 : f32 to vector<48x128xf32>
    %40 = arith.subf %39, %38 : vector<48x128xf32>
    %41 = math.exp %40 : vector<48x128xf32>
    %cst_35 = arith.constant 1.000000e+00 : f32
    %42 = vector.broadcast %cst_35 : f32 to vector<48x128xf32>
    %43 = arith.addf %42, %41 : vector<48x128xf32>
    %44 = tpu.reciprocal %43 {approx = true} : vector<48x128xf32> -> vector<48x128xf32>
    %cst_36 = arith.constant 0.000000e+00 : f32
    %45 = vector.broadcast %cst_36 : f32 to vector<48x128xf32>
    %46 = arith.subf %45, %5 : vector<48x128xf32>
    %47 = math.exp %46 : vector<48x128xf32>
    %cst_37 = arith.constant 1.000000e+00 : f32
    %48 = vector.broadcast %cst_37 : f32 to vector<48x128xf32>
    %49 = arith.addf %48, %47 : vector<48x128xf32>
    %50 = tpu.reciprocal %49 {approx = true} : vector<48x128xf32> -> vector<48x128xf32>
    %51 = arith.mulf %44, %50 : vector<48x128xf32>
    %cst_38 = arith.constant 0.000000e+00 : f32
    %52 = vector.broadcast %cst_38 : f32 to vector<8x128xf32>
    %53 = vector.extract_strided_slice %51 {offsets = [0, 0], sizes = [8, 128], strides = [1, 1]} : vector<48x128xf32> to vector<8x128xf32>
    %c1_i32 = arith.constant 1 : i32
    %54 = tpu.dynamic_rotate %52 by %c1_i32 dim 1 : vector<8x128xf32>, i32 -> vector<8x128xf32>
    %55 = arith.addf %54, %53 : vector<8x128xf32>
    %cst_39 = arith.constant 0.000000e+00 : f32
    %56 = vector.broadcast %cst_39 : f32 to vector<8x128xf32>
    %57 = arith.maximumf %55, %56 : vector<8x128xf32>
    %58 = vector.extract_strided_slice %51 {offsets = [8, 0], sizes = [8, 128], strides = [1, 1]} : vector<48x128xf32> to vector<8x128xf32>
    %c1_i32_40 = arith.constant 1 : i32
    %59 = tpu.dynamic_rotate %57 by %c1_i32_40 dim 1 : vector<8x128xf32>, i32 -> vector<8x128xf32>
    %60 = arith.addf %59, %58 : vector<8x128xf32>
    %cst_41 = arith.constant 0.000000e+00 : f32
    %61 = vector.broadcast %cst_41 : f32 to vector<8x128xf32>
    %62 = arith.maximumf %60, %61 : vector<8x128xf32>
    %63 = vector.extract_strided_slice %51 {offsets = [16, 0], sizes = [8, 128], strides = [1, 1]} : vector<48x128xf32> to vector<8x128xf32>
    %c1_i32_42 = arith.constant 1 : i32
    %64 = tpu.dynamic_rotate %62 by %c1_i32_42 dim 1 : vector<8x128xf32>, i32 -> vector<8x128xf32>
    %65 = arith.addf %64, %63 : vector<8x128xf32>
    %cst_43 = arith.constant 0.000000e+00 : f32
    %66 = vector.broadcast %cst_43 : f32 to vector<8x128xf32>
    %67 = arith.maximumf %65, %66 : vector<8x128xf32>
    %68 = vector.extract_strided_slice %51 {offsets = [24, 0], sizes = [8, 128], strides = [1, 1]} : vector<48x128xf32> to vector<8x128xf32>
    %c1_i32_44 = arith.constant 1 : i32
    %69 = tpu.dynamic_rotate %67 by %c1_i32_44 dim 1 : vector<8x128xf32>, i32 -> vector<8x128xf32>
    %70 = arith.addf %69, %68 : vector<8x128xf32>
    %cst_45 = arith.constant 0.000000e+00 : f32
    %71 = vector.broadcast %cst_45 : f32 to vector<8x128xf32>
    %72 = arith.maximumf %70, %71 : vector<8x128xf32>
    %73 = vector.extract_strided_slice %51 {offsets = [32, 0], sizes = [8, 128], strides = [1, 1]} : vector<48x128xf32> to vector<8x128xf32>
    %c1_i32_46 = arith.constant 1 : i32
    %74 = tpu.dynamic_rotate %72 by %c1_i32_46 dim 1 : vector<8x128xf32>, i32 -> vector<8x128xf32>
    %75 = arith.addf %74, %73 : vector<8x128xf32>
    %cst_47 = arith.constant 0.000000e+00 : f32
    %76 = vector.broadcast %cst_47 : f32 to vector<8x128xf32>
    %77 = arith.maximumf %75, %76 : vector<8x128xf32>
    %78 = vector.extract_strided_slice %51 {offsets = [40, 0], sizes = [8, 128], strides = [1, 1]} : vector<48x128xf32> to vector<8x128xf32>
    %c1_i32_48 = arith.constant 1 : i32
    %79 = tpu.dynamic_rotate %77 by %c1_i32_48 dim 1 : vector<8x128xf32>, i32 -> vector<8x128xf32>
    %80 = arith.addf %79, %78 : vector<8x128xf32>
    %cst_49 = arith.constant 0.000000e+00 : f32
    %81 = vector.broadcast %cst_49 : f32 to vector<8x128xf32>
    %82 = arith.maximumf %80, %81 : vector<8x128xf32>
    %c0_50 = arith.constant 0 : index
    %c0_51 = arith.constant 0 : index
    %83 = vector.load %arg16[%c0_50, %c0_51] : memref<8x128xf32, #tpu.memory_space<vmem>>, vector<8x128xf32>
    tpu.vector_store %arg16[%c0_50, %c0_51], %82 {strides = array<i32>} : memref<8x128xf32, #tpu.memory_space<vmem>>, vector<8x128xf32>,
    %c0_52 = arith.constant 0 : index
    %c0_53 = arith.constant 0 : index
    %84 = vector.load %arg13[%c0_52, %c0_53] : memref<128x128xf32, #tpu.memory_space<vmem>>, vector<128x128xf32>
    %cst_54 = arith.constant dense<0.000000e+00> : vector<8x128xf32>
    %85 = tpu.matmul %82, %84, %cst_54 {dimension_numbers = #tpu.dot_dimension_numbers<[1], [0], [0], [1], [0, 0, 1, 1], [], []>} : vector<8x128xf32>, vector<128x128xf32>, vector<8x128xf32> -> vector<8x128xf32>
    %c0_55 = arith.constant 0 : index
    %c0_56 = arith.constant 0 : index
    %86 = vector.load %arg14[%c0_55, %c0_56] : memref<1x128xf32, #tpu.memory_space<vmem>>, vector<1x128xf32>
    %87 = vector.broadcast %86 : vector<1x128xf32> to vector<8x128xf32>
    %88 = arith.addf %85, %87 : vector<8x128xf32>
    %cst_57 = arith.constant 0.000000e+00 : f32
    %89 = vector.broadcast %cst_57 : f32 to vector<8x128xf32>
    %90 = arith.subf %89, %88 : vector<8x128xf32>
    %91 = math.exp %90 : vector<8x128xf32>
    %cst_58 = arith.constant 1.000000e+00 : f32
    %92 = vector.broadcast %cst_58 : f32 to vector<8x128xf32>
    %93 = arith.addf %92, %91 : vector<8x128xf32>
    %94 = tpu.reciprocal %93 {approx = true} : vector<8x128xf32> -> vector<8x128xf32>
    %c0_59 = arith.constant 0 : index
    %c0_60 = arith.constant 0 : index
    %95 = vector.load %arg15[%c0_59, %c0_60] : memref<8x128xf32, #tpu.memory_space<vmem>>, vector<8x128xf32>
    tpu.vector_store %arg15[%c0_59, %c0_60], %94 {strides = array<i32>} : memref<8x128xf32, #tpu.memory_space<vmem>>, vector<8x128xf32>,
    return
  }
}

</mosaic_0001>

<bundles_post_ra>
// kernel: tpu_custom_call.1
= control target key start
LH: loop header
LB: loop body
LE: loop exit
PB: predicated region body
PF: predicated region fallthrough
CT: control target
= control target key end

     0   :  { %s1903_s0 = inlined_call_operand.vmem [shape: f32[48,16], index: 0, kind: input, shape index: {}]   ;;  %s1904_s1 = inlined_call_operand.vmem [shape: f32[16,128], index: 1, kind: input, shape index: {}]   ;;  %s1905_s2 = inlined_call_operand.vmem [shape: f32[1,128], index: 2, kind: input, shape index: {}]   ;;  %s1906_s3 = inlined_call_operand.vmem [shape: f32[16,128], index: 3, kind: input, shape index: {}]   ;;  %s1907_s4 = inlined_call_operand.vmem [shape: f32[1,128], index: 4, kind: input, shape index: {}]   ;;  %s1908_s5 = inlined_call_operand.hbm [shape: f32[128,128], index: 5, kind: input, shape index: {}]   ;;  %s1909_s6 = inlined_call_operand.vmem [shape: f32[1,128], index: 6, kind: input, shape index: {}]   ;;  %s1910_s7 = inlined_call_operand.hbm [shape: f32[128,128], index: 7, kind: input, shape index: {}]   ;;  %s1911_s8 = inlined_call_operand.vmem [shape: f32[1,128], index: 8, kind: input, shape index: {}]   ;;  %s1912_s9 = inlined_call_operand.hbm [shape: f32[128,128], index: 9, kind: input, shape index: {}]   ;;  %s1913_s10 = inlined_call_operand.vmem [shape: f32[1,128], index: 10, kind: input, shape index: {}]   ;;  %s1914_s11 = inlined_call_operand.hbm [shape: f32[128,128], index: 11, kind: input, shape index: {}]   ;;  %s1915_s12 = inlined_call_operand.vmem [shape: f32[1,128], index: 12, kind: input, shape index: {}]   ;;  %s1916_s13 = inlined_call_operand.hbm [shape: f32[128,128], index: 13, kind: input, shape index: {}]   ;;  %s1917_s14 = inlined_call_operand.vmem [shape: f32[1,128], index: 14, kind: input, shape index: {}]   ;;  %s1918_s15 = inlined_call_operand.hbm [shape: f32[8,128], index: 15, kind: output, shape index: {0}]   ;;  %s1919_s16 = inlined_call_operand.hbm [shape: f32[8,128], index: 16, kind: output, shape index: {1}]  }
   0x1   :  { %1921 = sst [smem:[#allocation19_spill]] %s1903_s0 }
   0x2   :  { %22 = vsyncpa [#allocation3], 0 }
   0x3   :  { %23 = vsyncpa [#allocation6], 0 }
   0x4   :  { %24 = vsyncpa [#allocation9], 0 }
   0x5   :  { %25 = vsyncpa [#allocation4], 0 }
   0x6   :  { %26 = vsyncpa [#allocation13], 0  ;;  %s1651_s21 = smov [#allocation5]   ;;  %s1652_s23 = smov [#allocation8]  }
   0x7   :  { %s56_s22 = sshll.u32 %s1651_s21, 4  ;;  %s84_s24 = sshll.u32 %s1652_s23, 4  ;;  %s57_s22 = int_to_ptr.vmem [resolvable:$true] %s56_s22  ;;  %s85_s24 = int_to_ptr.vmem [resolvable:$true] %s84_s24 }
   0x8   :  { %s1509_s25 = scalar_lea.vmem %s57_s22, 2048  ;;  %p1514_p1 = scmp.lt.s32.totalorder %s57_s22, %s57_s22 }
   0x9   :  { %p1510_p0 = scmp.ne.s32.totalorder %s57_s22, %s1509_s25  ;;  %p1515_p2 = scmp.lt.s32.totalorder %s1509_s25, %s1509_s25 }
   0xb   :  { %p1516_p3 = por %p1515_p2, %p1514_p1 }
   0xd   :  { %p1517_p4 = pnand %p1516_p3, %p1510_p0 }
   0xf   :  { %1520 = shalt.err (!%p1517_p4)
}
  0x10   :  { %s1653_s26 = smov 128   ;;  %s1654_s27 = smov 8  }
  0x11   :  { %62 = dma.hbm_to_vmem [thread:$0]  %s1910_s7, 2048, %s57_s22, [#allocation6], %s1653_s26, %s1653_s26, %s1654_s27  }
  0x12   :  { %s1529_s30 = scalar_lea.vmem %s85_s24, 2048  ;;  %p1534_p6 = scmp.lt.s32.totalorder %s85_s24, %s85_s24 }
  0x13   :  { %p1530_p5 = scmp.ne.s32.totalorder %s85_s24, %s1529_s30  ;;  %p1535_p7 = scmp.lt.s32.totalorder %s1529_s30, %s1529_s30 }
  0x15   :  { %p1536_p8 = por %p1535_p7, %p1534_p6 }
  0x17   :  { %p1537_p9 = pnand %p1536_p8, %p1530_p5 }
  0x19   :  { %1540 = shalt.err (!%p1537_p9)
}
  0x1a   :  { %90 = dma.hbm_to_vmem [thread:$0]  %s1914_s11, 2048, %s85_s24, [#allocation9], %s1653_s26, %s1653_s26, %s1654_s27  }
  0x1b   :  { %s1655_s18 = smov [#allocation2]   ;;  %s1656_s20 = smov [#allocation7]  }
  0x1c   :  { %s42_s19 = sshll.u32 %s1655_s18, 4  ;;  %s70_s21 = sshll.u32 %s1656_s20, 4  ;;  %s43_s19 = int_to_ptr.vmem [resolvable:$true] %s42_s19  ;;  %s71_s21 = int_to_ptr.vmem [resolvable:$true] %s70_s21 }
  0x1d   :  { %s1549_s7 = scalar_lea.vmem %s43_s19, 2048  ;;  %p1554_p11 = scmp.lt.s32.totalorder %s43_s19, %s43_s19 }
  0x1e   :  { %p1550_p10 = scmp.ne.s32.totalorder %s43_s19, %s1549_s7  ;;  %p1555_p12 = scmp.lt.s32.totalorder %s1549_s7, %s1549_s7 }
  0x20   :  { %p1556_p13 = por %p1555_p12, %p1554_p11 }
  0x22   :  { %p1557_p0 = pnand %p1556_p13, %p1550_p10 }
  0x24   :  { %1560 = shalt.err (!%p1557_p0)
}
  0x25   :  { %48 = dma.hbm_to_vmem [thread:$0]  %s1908_s5, 2048, %s43_s19, [#allocation3], %s1653_s26, %s1653_s26, %s1654_s27  }
  0x26   :  { %s1569_s11 = scalar_lea.vmem %s71_s21, 2048  ;;  %p1574_p2 = scmp.lt.s32.totalorder %s71_s21, %s71_s21 }
  0x27   :  { %p1570_p1 = scmp.ne.s32.totalorder %s71_s21, %s1569_s11  ;;  %p1575_p3 = scmp.lt.s32.totalorder %s1569_s11, %s1569_s11 }
  0x29   :  { %p1576_p4 = por %p1575_p3, %p1574_p2 }
  0x2b   :  { %p1577_p5 = pnand %p1576_p4, %p1570_p1 }
  0x2d   :  { %1580 = shalt.err (!%p1577_p5)
}
  0x2e   :  { %76 = dma.hbm_to_vmem [thread:$0]  %s1912_s9, 2048, %s71_s21, [#allocation6], %s1653_s26, %s1653_s26, %s1654_s27  }
  0x2f   :  { %s1657_s28 = smov [#allocation10]  }
  0x30   :  { %s98_s29 = sshll.u32 %s1657_s28, 4  ;;  %s99_s29 = int_to_ptr.vmem [resolvable:$true] %s98_s29 }
  0x31   :  { %s1589_s30 = scalar_lea.vmem %s99_s29, 2048  ;;  %p1594_p7 = scmp.lt.s32.totalorder %s99_s29, %s99_s29 }
  0x32   :  { %p1590_p6 = scmp.ne.s32.totalorder %s99_s29, %s1589_s30  ;;  %p1595_p8 = scmp.lt.s32.totalorder %s1589_s30, %s1589_s30 }
  0x34   :  { %p1596_p9 = por %p1595_p8, %p1594_p7 }
  0x36   :  { %p1597_p10 = pnand %p1596_p9, %p1590_p6 }
  0x38   :  { %1600 = shalt.err (!%p1597_p10)
}
  0x39   :  { %104 = dma.hbm_to_vmem [thread:$0]  %s1916_s13, 2048, %s99_s29, [#allocation9], %s1653_s26, %s1653_s26, %s1654_s27  }
  0x3a   :  { %1641 = dma.done.wait [#allocation3], 2048  }
  0x3b   :  { %1642 = vsyncadd [#allocation3], 4294965248 }
  0x3c   :  { %1643 = dma.done.wait [#allocation6], 4096  }
  0x3d   :  { %1644 = vsyncadd [#allocation6], 4294963200 }
  0x3e   :  { %1645 = dma.done.wait [#allocation9], 4096  }
  0x3f   :  { %1646 = vsyncadd [#allocation9], 4294963200  ;;  %vm137_vm0 = vcmask 130048   ;;  %v129_v0 = vld [vmem:[%s1904_s1 + $0x8] sm:$0xff]  ;;  %v128_v1 = vld [vmem:[%s1904_s1] sm:$0xff]  ;;  %s1922_s7 = sld [smem:[#allocation19_spill]] }
  0x40   :  { %1212 = vmatprep.subr.mxu1 %v129_v0  ;;  %v252_v4 = vld [vmem:[%s1906_s3 + $0x8] sm:$0xff]  ;;  %v376_v6 = vld [vmem:[#allocation2 + $0x78] sm:$0xff]  ;;  %v251_v7 = vld [vmem:[%s1906_s3] sm:$0xff]  ;;  %vm1660_vm1 = vmmov 0  }
  0x41   :  { %1213 = vmatpush3.msra.mxu1 %v129_v0  ;;  %1238 = vmatprep.subr.mxu0 %v376_v6  ;;  %v375_v8 = vld [vmem:[#allocation2 + $0x70] sm:$0xff]  ;;  %v374_v11 = vld [vmem:[#allocation2 + $0x68] sm:$0xff]  ;;  %v373_v12 = vld [vmem:[#allocation2 + $0x60] sm:$0xff] }
  0x42   :  { %1214 = vmatprep.subr.mxu1 %v128_v1  ;;  %1239 = vmatpush3.msra.mxu0 %v376_v6  ;;  %v372_v14 = vld [vmem:[#allocation2 + $0x58] sm:$0xff]  ;;  %v371_v15 = vld [vmem:[#allocation2 + $0x50] sm:$0xff]  ;;  %v370_v16 = vld [vmem:[#allocation2 + $0x48] sm:$0xff] }
  0x43   :  { %1215 = vmatpush3.msra.mxu1 %v128_v1  ;;  %1240 = vmatprep.subr.mxu0 %v375_v8  ;;  %v369_v17 = vld [vmem:[#allocation2 + $0x40] sm:$0xff]  ;;  %v368_v18 = vld [vmem:[#allocation2 + $0x38] sm:$0xff]  ;;  %v367_v19 = vld [vmem:[#allocation2 + $0x30] sm:$0xff] }
  0x44   :  { %1225 = vmatprep.subr.mxu1 %v252_v4  ;;  %1241 = vmatpush3.msra.mxu0 %v375_v8  ;;  %v366_v20 = vld [vmem:[#allocation2 + $0x28] sm:$0xff]  ;;  %v365_v21 = vld [vmem:[#allocation2 + $0x20] sm:$0xff]  ;;  %v364_v22 = vld [vmem:[#allocation2 + $0x18] sm:$0xff] }
  0x45   :  { %v122_v2 = vld [vmem:[%s1922_s7] sm:$0xff]  ;;  %v123_v3 = vld [vmem:[%s1922_s7 + $0x8] sm:$0xff]  ;;  %v124_v5 = vld [vmem:[%s1922_s7 + $0x10] sm:$0xff]  ;;  %1242 = vmatprep.subr.mxu0 %v374_v11 }
  0x46   :  { %1216 = vmatprep.mubr.msk.f32.mxu1 %vm137_vm0, %v122_v2  ;;  %v125_v9 = vld [vmem:[%s1922_s7 + $0x18] sm:$0xff]  ;;  %v126_v10 = vld [vmem:[%s1922_s7 + $0x20] sm:$0xff]  ;;  %v127_v13 = vld [vmem:[%s1922_s7 + $0x28] sm:$0xff]  ;;  %1243 = vmatpush3.msra.mxu0 %v374_v11 }
  0x47   :  { %1217 = vmatmul.mubr.msk.f32.vlgmr.msra.gmra.mxu1 %vm137_vm0, %v123_v3  ;;  %1244 = vmatprep.subr.mxu0 %v373_v12  ;;  %v363_v23 = vld [vmem:[#allocation2 + $0x10] sm:$0xff]  ;;  %v362_v24 = vld [vmem:[#allocation2 + $0x8] sm:$0xff]  ;;  %v361_v25 = vld [vmem:[#allocation2] sm:$0xff] }
  0x48   :  { %1226 = vmatpush3.msra.mxu1 %v252_v4  ;;  %1219 = vmatprep.mubr.msk.f32.mxu1 %vm137_vm0, %v124_v5  ;;  %v500_v26 = vld [vmem:[#allocation5 + $0x78] sm:$0xff]  ;;  %v499_v27 = vld [vmem:[#allocation5 + $0x70] sm:$0xff]  ;;  %v498_v28 = vld [vmem:[#allocation5 + $0x68] sm:$0xff] }
  0x49   :  { %1227 = vmatprep.subr.mxu1 %v251_v7  ;;  %1245 = vmatpush3.msra.mxu0 %v373_v12  ;;  %v497_v29 = vld [vmem:[#allocation5 + $0x60] sm:$0xff]  ;;  %v496_v30 = vld [vmem:[#allocation5 + $0x58] sm:$0xff]  ;;  %v495_v31 = vld [vmem:[#allocation5 + $0x50] sm:$0xff] }
  0x4a   :  { %1228 = vmatpush3.msra.mxu1 %v251_v7  ;;  %1246 = vmatprep.subr.mxu0 %v372_v14  ;;  %v494_v32 = vld [vmem:[#allocation5 + $0x48] sm:$0xff]  ;;  %v493_v33 = vld [vmem:[#allocation5 + $0x40] sm:$0xff]  ;;  %v492_v34 = vld [vmem:[#allocation5 + $0x38] sm:$0xff] }
  0x4b   :  { %1220 = vmatmul.mubr.msk.f32.gmra.mxu1 %vm137_vm0, %v125_v9  ;;  %1247 = vmatpush3.msra.mxu0 %v372_v14  ;;  %v491_v35 = vld [vmem:[#allocation5 + $0x30] sm:$0xff]  ;;  %v490_v36 = vld [vmem:[#allocation5 + $0x28] sm:$0xff]  ;;  %v489_v37 = vld [vmem:[#allocation5 + $0x20] sm:$0xff] }
  0x4c   :  { %1222 = vmatprep.mubr.msk.f32.mxu1 %vm137_vm0, %v126_v10  ;;  %1248 = vmatprep.subr.mxu0 %v371_v15  ;;  %v1823_v38 = vld [vmem:[%s1905_s2] ss:$0 sm:$0xff]  ;;  %v487_v6 = vld [vmem:[#allocation5 + $0x10] sm:$0xff]  ;;  %v486_v7 = vld [vmem:[#allocation5 + $0x8] sm:$0xff] }
  0x4d   :  { %1249 = vmatpush3.msra.mxu0 %v371_v15  ;;  %1279 = vmatprep.subr.mxu1 %v500_v26  ;;  %v1079_v50 = vld [vmem:[%s1907_s4] ss:$0 sm:$0xff]  ;;  %v622_v11 = vld [vmem:[#allocation7 + $0x68] sm:$0xff]  ;;  %v619_v14 = vld [vmem:[#allocation7 + $0x50] sm:$0xff] }
  0x4e   :  { %1250 = vmatprep.subr.mxu0 %v370_v16  ;;  %v485_v8 = vld [vmem:[#allocation5] sm:$0xff]  ;;  %v618_v15 = vld [vmem:[#allocation7 + $0x48] sm:$0xff] }
  0x4f   :  { %1223 = vmatmul.mubr.msk.f32.gmra.mxu1 %vm137_vm0, %v127_v13  ;;  %1251 = vmatpush3.msra.mxu0 %v370_v16  ;;  %v621_v12 = vld [vmem:[#allocation7 + $0x60] sm:$0xff] }
  0x50   :  { %1229 = vmatprep.mubr.msk.f32.mxu1 %vm137_vm0, %v122_v2  ;;  %1252 = vmatprep.subr.mxu0 %v369_v17  ;;  %v617_v16 = vld [vmem:[#allocation7 + $0x40] sm:$0xff] }
  0x51   :  { %1253 = vmatpush3.msra.mxu0 %v369_v17  ;;  %v616_v17 = vld [vmem:[#allocation7 + $0x38] sm:$0xff] }
  0x52   :  { %1254 = vmatprep.subr.mxu0 %v368_v18 }
  0x53   :  { %1230 = vmatmul.mubr.msk.f32.vlgmr.msra.gmra.mxu1 %vm137_vm0, %v123_v3  ;;  %1255 = vmatpush3.msra.mxu0 %v368_v18  ;;  %v615_v18 = vld [vmem:[#allocation7 + $0x30] sm:$0xff] }
  0x54   :  { %1232 = vmatprep.mubr.msk.f32.mxu1 %vm137_vm0, %v124_v5  ;;  %1256 = vmatprep.subr.mxu0 %v367_v19  ;;  %v488_v5 = vld [vmem:[#allocation5 + $0x18] sm:$0xff] }
  0x55   :  { %1257 = vmatpush3.msra.mxu0 %v367_v19  ;;  %1280 = vmatpush3.msra.mxu1 %v500_v26  ;;  %v614_v19 = vld [vmem:[#allocation7 + $0x28] sm:$0xff] }
  0x56   :  { %1258 = vmatprep.subr.mxu0 %v366_v20  ;;  %1281 = vmatprep.subr.mxu1 %v499_v27 }
  0x57   :  { %1233 = vmatmul.mubr.msk.f32.gmra.mxu1 %vm137_vm0, %v125_v9  ;;  %1259 = vmatpush3.msra.mxu0 %v366_v20  ;;  %v624_v9 = vld [vmem:[#allocation7 + $0x78] sm:$0xff]  ;;  %v613_v20 = vld [vmem:[#allocation7 + $0x20] sm:$0xff] }
  0x58   :  { %1235 = vmatprep.mubr.msk.f32.mxu1 %vm137_vm0, %v126_v10  ;;  %1260 = vmatprep.subr.mxu0 %v365_v21  ;;  %v623_v10 = vld [vmem:[#allocation7 + $0x70] sm:$0xff] }
  0x59   :  { %1261 = vmatpush3.msra.mxu0 %v365_v21  ;;  %1282 = vmatpush3.msra.mxu1 %v499_v27  ;;  %v1086_v21 = vld [vmem:[%s1909_s6] ss:$0 sm:$0xff] }
  0x5a   :  { %1262 = vmatprep.subr.mxu0 %v364_v22  ;;  %1283 = vmatprep.subr.mxu1 %v498_v28 }
  0x5b   :  { %1236 = vmatmul.mubr.msk.f32.gmra.mxu1 %vm137_vm0, %v127_v13  ;;  %1263 = vmatpush3.msra.mxu0 %v364_v22  ;;  %v620_v13 = vld [vmem:[#allocation7 + $0x58] sm:$0xff] }
  0x5c   :  { %1264 = vmatprep.subr.mxu0 %v363_v23  ;;  %1284 = vmatpush3.msra.mxu1 %v498_v28 }
  0x5d   :  { %1265 = vmatpush3.msra.mxu0 %v363_v23  ;;  %1285 = vmatprep.subr.mxu1 %v497_v29 }
  0x5e   :  { %1266 = vmatprep.subr.mxu0 %v362_v24  ;;  %1286 = vmatpush3.msra.mxu1 %v497_v29 }
  0x5f   :  { %1267 = vmatpush3.msra.mxu0 %v362_v24  ;;  %1287 = vmatprep.subr.mxu1 %v496_v30 }
  0x60   :  { %1268 = vmatprep.subr.mxu0 %v361_v25  ;;  %1288 = vmatpush3.msra.mxu1 %v496_v30 }
  0x61   :  { %1269 = vmatpush3.msra.mxu0 %v361_v25  ;;  %1289 = vmatprep.subr.mxu1 %v495_v31 }
  0x62   :  { %1290 = vmatpush3.msra.mxu1 %v495_v31  ;;  %1320 = vmatprep.subr.mxu0 %v624_v9 }
  0x63   :  { %1291 = vmatprep.subr.mxu1 %v494_v32 }
  0x64   :  { %1292 = vmatpush3.msra.mxu1 %v494_v32 }
  0x65   :  { %1293 = vmatprep.subr.mxu1 %v493_v33 }
  0x66   :  { %1294 = vmatpush3.msra.mxu1 %v493_v33 }
  0x67   :  { %1295 = vmatprep.subr.mxu1 %v492_v34 }
  0x68   :  { %1296 = vmatpush3.msra.mxu1 %v492_v34 }
  0x69   :  { %1297 = vmatprep.subr.mxu1 %v491_v35 }
  0x6a   :  { %1298 = vmatpush3.msra.mxu1 %v491_v35 }
  0x6b   :  { %1299 = vmatprep.subr.mxu1 %v490_v36 }
  0x6c   :  { %1300 = vmatpush3.msra.mxu1 %v490_v36 }
  0x6d   :  { %1301 = vmatprep.subr.mxu1 %v489_v37 }
  0x6e   :  { %1302 = vmatpush3.msra.mxu1 %v489_v37 }
  0x6f   :  { %1303 = vmatprep.subr.mxu1 %v488_v5 }
  0x70   :  { %1304 = vmatpush3.msra.mxu1 %v488_v5 }
  0x71   :  { %1305 = vmatprep.subr.mxu1 %v487_v6 }
  0x72   :  { %1306 = vmatpush3.msra.mxu1 %v487_v6 }
  0x73   :  { %1307 = vmatprep.subr.mxu1 %v486_v7 }
  0x74   :  { %1308 = vmatpush3.msra.mxu1 %v486_v7 }
  0x75   :  { %1309 = vmatprep.subr.mxu1 %v485_v8 }
  0x76   :  { %1310 = vmatpush3.msra.mxu1 %v485_v8 }
 0x107   :  { %v1218_v39 = vpop.f32.mrf.mxu1 }
 0x108   :  { %v1826_v40 = vadd.f32 %v1218_v39, %v1823_v38 }
 0x109   :  { %v1828_v41 = vpop.f32.mrf.mxu1 }
 0x10b   :  { %v1221_v42 = vpop.f32.mrf.mxu1 }
 0x10c   :  { %v1831_v43 = vadd.f32 %v1221_v42, %v1823_v38 }
 0x10d   :  { %v232_v44 = vpop.f32.mrf.mxu1 }
 0x10e   :  { %v1834_v45 = vadd.f32 %v1823_v38, %v232_v44  ;;  %v612_v44 = vld [vmem:[#allocation7 + $0x18] sm:$0xff] }
 0x10f   :  { %v1224_v46 = vpop.f32.mrf.mxu1 }
 0x110   :  { %v1837_v47 = vadd.f32 %v1224_v46, %v1823_v38  ;;  %v611_v46 = vld [vmem:[#allocation7 + $0x10] sm:$0xff] }
 0x111   :  { %v242_v48 = vpop.f32.mrf.mxu1 }
 0x112   :  { %v1840_v49 = vadd.f32 %v1823_v38, %v242_v48  ;;  %v610_v48 = vld [vmem:[#allocation7 + $0x8] sm:$0xff] }
 0x113   :  { %v1231_v51 = vpop.f32.mrf.mxu1 }
 0x114   :  { %v332_v52 = vadd.f32 %v1231_v51, %v1079_v50  ;;  %v748_v51 = vld [vmem:[#allocation8 + $0x78] sm:$0xff] }
 0x115   :  { %v326_v53 = vpop.f32.mrf.mxu1  ;;  %1361 = vmatprep.subr.mxu1 %v748_v51 }
 0x116   :  { %v327_v54 = vadd.f32 %v1079_v50, %v326_v53  ;;  %v356_v58 = vmax.f32 %v332_v52, 0.0  ;;  %v747_v52 = vld [vmem:[#allocation8 + $0x70] sm:$0xff]  ;;  %v746_v53 = vld [vmem:[#allocation8 + $0x68] sm:$0xff] }
 0x117   :  { %v1234_v55 = vpop.f32.mrf.mxu1 }
 0x118   :  { %v342_v56 = vadd.f32 %v1234_v55, %v1079_v50  ;;  %v355_v57 = vmax.f32 %v327_v54, 0.0  ;;  %v745_v54 = vld [vmem:[#allocation8 + $0x60] sm:$0xff]  ;;  %v744_v55 = vld [vmem:[#allocation8 + $0x58] sm:$0xff] }
 0x119   :  { %v336_v59 = vpop.f32.mrf.mxu1 }
 0x11a   :  { %v337_v60 = vadd.f32 %v1079_v50, %v336_v59  ;;  %1270 = vmatprep.mubr.f32.mxu0 %v355_v57  ;;  %v358_v61 = vmax.f32 %v342_v56, 0.0  ;;  %v743_v56 = vld [vmem:[#allocation8 + $0x50] sm:$0xff]  ;;  %v742_v57 = vld [vmem:[#allocation8 + $0x48] sm:$0xff]  ;;  %v740_v59 = vld [vmem:[#allocation8 + $0x38] sm:$0xff] }
 0x11b   :  { %v1237_v62 = vpop.f32.mrf.mxu1  ;;  %1271 = vmatmul.mubr.f32.vlgmr.msra.gmra.mxu0 %v356_v58  ;;  %v741_v58 = vld [vmem:[#allocation8 + $0x40] sm:$0xff] }
 0x11c   :  { %v357_v63 = vmax.f32 %v337_v60, 0.0  ;;  %v352_v0 = vadd.f32 %v1237_v62, %v1079_v50  ;;  %1321 = vmatpush3.msra.mxu0 %v624_v9  ;;  %v739_v60 = vld [vmem:[#allocation8 + $0x30] sm:$0xff]  ;;  %v737_v62 = vld [vmem:[#allocation8 + $0x20] sm:$0xff] }
 0x11d   :  { %v346_v1 = vpop.f32.mrf.mxu1  ;;  %1322 = vmatprep.subr.mxu0 %v623_v10 }
 0x11e   :  { %v347_v2 = vadd.f32 %v1079_v50, %v346_v1  ;;  %1273 = vmatprep.mubr.f32.mxu0 %v357_v63  ;;  %v360_v3 = vmax.f32 %v352_v0, 0.0  ;;  %1323 = vmatpush3.msra.mxu0 %v623_v10  ;;  %v609_v50 = vld [vmem:[#allocation7] sm:$0xff] }
 0x11f   :  { %1274 = vmatmul.mubr.f32.gmra.mxu0 %v358_v61  ;;  %1324 = vmatprep.subr.mxu0 %v622_v11  ;;  %v738_v61 = vld [vmem:[#allocation8 + $0x28] sm:$0xff]  ;;  %v1087_v63 = vld [vmem:[%s1911_s8] ss:$0 sm:$0xff]  ;;  %s1659_s8 = smov 1  }
 0x120   :  { %v359_v4 = vmax.f32 %v347_v2, 0.0  ;;  %1325 = vmatpush3.msra.mxu0 %v622_v11 }
 0x121   :  { %1326 = vmatprep.subr.mxu0 %v621_v12 }
 0x122   :  { %1276 = vmatprep.mubr.f32.mxu0 %v359_v4  ;;  %1327 = vmatpush3.msra.mxu0 %v621_v12 }
 0x123   :  { %1277 = vmatmul.mubr.f32.gmra.mxu0 %v360_v3  ;;  %1328 = vmatprep.subr.mxu0 %v620_v13 }
 0x124   :  { %1329 = vmatpush3.msra.mxu0 %v620_v13 }
 0x125   :  { %1330 = vmatprep.subr.mxu0 %v619_v14 }
 0x126   :  { %1331 = vmatpush3.msra.mxu0 %v619_v14 }
 0x127   :  { %1332 = vmatprep.subr.mxu0 %v618_v15 }
 0x128   :  { %1333 = vmatpush3.msra.mxu0 %v618_v15 }
 0x129   :  { %1334 = vmatprep.subr.mxu0 %v617_v16 }
 0x12a   :  { %1335 = vmatpush3.msra.mxu0 %v617_v16 }
 0x12b   :  { %1336 = vmatprep.subr.mxu0 %v616_v17 }
 0x12c   :  { %1337 = vmatpush3.msra.mxu0 %v616_v17 }
 0x12d   :  { %1338 = vmatprep.subr.mxu0 %v615_v18 }
 0x12e   :  { %1339 = vmatpush3.msra.mxu0 %v615_v18  ;;  %v736_v18 = vld [vmem:[#allocation8 + $0x18] sm:$0xff] }
 0x12f   :  { %1340 = vmatprep.subr.mxu0 %v614_v19 }
 0x130   :  { %1341 = vmatpush3.msra.mxu0 %v614_v19  ;;  %v735_v19 = vld [vmem:[#allocation8 + $0x10] sm:$0xff] }
 0x131   :  { %1342 = vmatprep.subr.mxu0 %v613_v20 }
 0x132   :  { %1343 = vmatpush3.msra.mxu0 %v613_v20  ;;  %v734_v20 = vld [vmem:[#allocation8 + $0x8] sm:$0xff] }
 0x133   :  { %1344 = vmatprep.subr.mxu0 %v612_v44 }
 0x134   :  { %1345 = vmatpush3.msra.mxu0 %v612_v44 }
 0x135   :  { %1346 = vmatprep.subr.mxu0 %v611_v46 }
 0x136   :  { %1347 = vmatpush3.msra.mxu0 %v611_v46 }
 0x137   :  { %1348 = vmatprep.subr.mxu0 %v610_v48 }
 0x138   :  { %1349 = vmatpush3.msra.mxu0 %v610_v48  ;;  %v223_v48 = vadd.f32 %v1823_v38, %v1828_v41 }
 0x139   :  { %1350 = vmatprep.subr.mxu0 %v609_v50 }
 0x13a   :  { %1351 = vmatpush3.msra.mxu0 %v609_v50  ;;  %v882_v50 = vsub.f32 0.0, %v1826_v40 }
 0x1db   :  { %v1272_v22 = vpop.f32.mrf.mxu0 }
 0x1dc   :  { %v456_v23 = vadd.f32 %v1272_v22, %v1086_v21  ;;  %v1658_v22 = vmov 0.0  }
 0x1dd   :  { %v450_v24 = vpop.f32.mrf.mxu0  ;;  %917 = vrot.lane.b32.xlu0 %v1658_v22, %s1659_s8  ;;  %1402 = vmatprep.subr.mxu0 %v1658_v22 }
 0x1de   :  { %v451_v25 = vadd.f32 %v1086_v21, %v450_v24  ;;  %v480_v29 = vmax.f32 %v456_v23, 0.0  ;;  %v1088_v23 = vld [vmem:[%s1913_s10] ss:$0 sm:$0xff] }
 0x1df   :  { %v1275_v26 = vpop.f32.mrf.mxu0 }
 0x1e0   :  { %v479_v27 = vmax.f32 %v451_v25, 0.0  ;;  %v466_v28 = vadd.f32 %v1275_v26, %v1086_v21 }
 0x1e1   :  { %v460_v30 = vpop.f32.mrf.mxu0 }
 0x1e2   :  { %v461_v31 = vadd.f32 %v1086_v21, %v460_v30  ;;  %1311 = vmatprep.mubr.f32.mxu1 %v479_v27  ;;  %v482_v32 = vmax.f32 %v466_v28, 0.0 }
 0x1e3   :  { %v1278_v33 = vpop.f32.mrf.mxu0  ;;  %1312 = vmatmul.mubr.f32.vlgmr.msra.gmra.mxu1 %v480_v29 }
 0x1e4   :  { %v481_v34 = vmax.f32 %v461_v31, 0.0  ;;  %v476_v35 = vadd.f32 %v1278_v33, %v1086_v21  ;;  %1362 = vmatpush3.msra.mxu1 %v748_v51  ;;  %v881_v51 = vsub.f32 0.0, %v223_v48 }
 0x1e5   :  { %v470_v36 = vpop.f32.mrf.mxu0  ;;  %1363 = vmatprep.subr.mxu1 %v747_v52 }
 0x1e6   :  { %v471_v37 = vadd.f32 %v1086_v21, %v470_v36  ;;  %1314 = vmatprep.mubr.f32.mxu1 %v481_v34  ;;  %v484_v39 = vmax.f32 %v476_v35, 0.0  ;;  %1364 = vmatpush3.msra.mxu1 %v747_v52  ;;  %v733_v21 = vld [vmem:[#allocation8] sm:$0xff]  ;;  %v889_v52 = vmul.f32 1.442695, %v882_v50 }
 0x1e7   :  { %1315 = vmatmul.mubr.f32.gmra.mxu1 %v482_v32  ;;  %1365 = vmatprep.subr.mxu1 %v746_v53 }
 0x1e8   :  { %v483_v42 = vmax.f32 %v471_v37, 0.0  ;;  %1366 = vmatpush3.msra.mxu1 %v746_v53  ;;  %v884_v53 = vsub.f32 0.0, %v1831_v43  ;;  %1449 = vpow2.f32 %v889_v52  ;;  %v885_v43 = vsub.f32 0.0, %v1840_v49 }
 0x1e9   :  { %1367 = vmatprep.subr.mxu1 %v745_v54 }
 0x1ea   :  { %1317 = vmatprep.mubr.f32.mxu1 %v483_v42  ;;  %1368 = vmatpush3.msra.mxu1 %v745_v54  ;;  %v1089_v54 = vld [vmem:[%s1915_s12] ss:$0 sm:$0xff]  ;;  %s1661_s12 = smov [#allocation12]  }
 0x1eb   :  { %1318 = vmatmul.mubr.f32.gmra.mxu1 %v484_v39  ;;  %1369 = vmatprep.subr.mxu1 %v744_v55  ;;  %s1057_s13 = sshll.u32 %s1661_s12, 4  ;;  %s1058_s13 = int_to_ptr.vmem [resolvable:$true] %s1057_s13 }
 0x1ec   :  { %1370 = vmatpush3.msra.mxu1 %v744_v55  ;;  %v887_v55 = vmul.f32 1.442695, %v881_v51  ;;  %s1601_s26 = scalar_lea.vmem %s1058_s13, 128  ;;  %p1606_p12 = scmp.lt.s32.totalorder %s1058_s13, %s1058_s13 }
 0x1ed   :  { %1371 = vmatprep.subr.mxu1 %v743_v56  ;;  %p1602_p11 = scmp.ne.s32.totalorder %s1058_s13, %s1601_s26  ;;  %p1607_p13 = scmp.lt.s32.totalorder %s1601_s26, %s1601_s26 }
 0x1ee   :  { %1372 = vmatpush3.msra.mxu1 %v743_v56  ;;  %v883_v56 = vsub.f32 0.0, %v1834_v45  ;;  %1451 = vpow2.f32 %v887_v55 }
 0x1ef   :  { %1373 = vmatprep.subr.mxu1 %v742_v57  ;;  %p1608_p0 = por %p1607_p13, %p1606_p12 }
 0x1f0   :  { %1374 = vmatpush3.msra.mxu1 %v742_v57 }
 0x1f1   :  { %1375 = vmatprep.subr.mxu1 %v741_v58  ;;  %p1609_p1 = pnand %p1608_p0, %p1602_p11 }
 0x1f2   :  { %1376 = vmatpush3.msra.mxu1 %v741_v58 }
 0x1f3   :  { %1377 = vmatprep.subr.mxu1 %v740_v59 }
 0x1f4   :  { %1378 = vmatpush3.msra.mxu1 %v740_v59  ;;  %v893_v59 = vmul.f32 1.442695, %v884_v53 }
 0x1f5   :  { %1379 = vmatprep.subr.mxu1 %v739_v60 }
 0x1f6   :  { %1380 = vmatpush3.msra.mxu1 %v739_v60  ;;  %v886_v60 = vsub.f32 0.0, %v1837_v47  ;;  %1453 = vpow2.f32 %v893_v59  ;;  %v895_v47 = vmul.f32 1.442695, %v885_v43 }
 0x1f7   :  { %1381 = vmatprep.subr.mxu1 %v738_v61 }
 0x1f8   :  { %1382 = vmatpush3.msra.mxu1 %v738_v61  ;;  %v891_v61 = vmul.f32 1.442695, %v883_v56 }
 0x1f9   :  { %1383 = vmatprep.subr.mxu1 %v737_v62 }
 0x1fa   :  { %1384 = vmatpush3.msra.mxu1 %v737_v62 }
 0x1fb   :  { %1385 = vmatprep.subr.mxu1 %v736_v18 }
 0x1fc   :  { %1386 = vmatpush3.msra.mxu1 %v736_v18 }
 0x1fd   :  { %1387 = vmatprep.subr.mxu1 %v735_v19 }
 0x1fe   :  { %1388 = vmatpush3.msra.mxu1 %v735_v19 }
 0x1ff   :  { %1389 = vmatprep.subr.mxu1 %v734_v20 }
 0x200   :  { %1390 = vmatpush3.msra.mxu1 %v734_v20 }
 0x201   :  { %1391 = vmatprep.subr.mxu1 %v733_v21 }
 0x202   :  { %1392 = vmatpush3.msra.mxu1 %v733_v21 }
 0x24f   :  { %v918_v53 = vpop.permute.xlu0 %917 }
 0x2a3   :  { %v1313_v0 = vpop.f32.mrf.mxu1 }
 0x2a4   :  { %v580_v1 = vadd.f32 %v1313_v0, %v1087_v63 }
 0x2a5   :  { %v574_v2 = vpop.f32.mrf.mxu1 }
 0x2a6   :  { %v575_v3 = vadd.f32 %v1087_v63, %v574_v2  ;;  %v604_v7 = vmax.f32 %v580_v1, 0.0  ;;  %v897_v2 = vmul.f32 1.442695, %v886_v60 }
 0x2a7   :  { %v1316_v4 = vpop.f32.mrf.mxu1 }
 0x2a8   :  { %v603_v5 = vmax.f32 %v575_v3, 0.0  ;;  %v590_v6 = vadd.f32 %v1316_v4, %v1087_v63 }
 0x2a9   :  { %v584_v8 = vpop.f32.mrf.mxu1 }
 0x2aa   :  { %v585_v9 = vadd.f32 %v1087_v63, %v584_v8  ;;  %1352 = vmatprep.mubr.f32.mxu0 %v603_v5  ;;  %v606_v10 = vmax.f32 %v590_v6, 0.0 }
 0x2ab   :  { %v1319_v11 = vpop.f32.mrf.mxu1  ;;  %1353 = vmatmul.mubr.f32.vlgmr.msra.gmra.mxu0 %v604_v7 }
 0x2ac   :  { %v605_v12 = vmax.f32 %v585_v9, 0.0  ;;  %v600_v13 = vadd.f32 %v1319_v11, %v1087_v63 }
 0x2ad   :  { %v594_v14 = vpop.f32.mrf.mxu1 }
 0x2ae   :  { %v595_v15 = vadd.f32 %v1087_v63, %v594_v14  ;;  %1355 = vmatprep.mubr.f32.mxu0 %v605_v12  ;;  %v608_v16 = vmax.f32 %v600_v13, 0.0 }
 0x2af   :  { %1356 = vmatmul.mubr.f32.gmra.mxu0 %v606_v10 }
 0x2b0   :  { %v607_v17 = vmax.f32 %v595_v15, 0.0  ;;  %v1450_v15 = vpop.eup %1449 }
 0x2b1   :  { %v900_v18 = vadd.f32 1.0, %v1450_v15  ;;  %v949_v15 = vld [vmem:[#allocation10 + $0x38] sm:$0xff] }
 0x2b2   :  { %1358 = vmatprep.mubr.f32.mxu0 %v607_v17  ;;  %v1452_v17 = vpop.eup %1451 }
 0x2b3   :  { %1359 = vmatmul.mubr.f32.gmra.mxu0 %v608_v16  ;;  %v1454_v19 = vpop.eup %1453  ;;  %v899_v21 = vadd.f32 1.0, %v1452_v17  ;;  %v947_v17 = vld [vmem:[#allocation10 + $0x28] sm:$0xff] }
 0x2b4   :  { %1434 = vmatprep.mubr.msk.f32.mxu0 %vm1660_vm1, %v1658_v22 }
 0x36b   :  { %v1354_v24 = vpop.f32.mrf.mxu0 }
 0x36c   :  { %v704_v25 = vadd.f32 %v1354_v24, %v1088_v23 }
 0x36d   :  { %v698_v26 = vpop.f32.mrf.mxu0 }
 0x36e   :  { %v699_v27 = vadd.f32 %v1088_v23, %v698_v26  ;;  %v728_v31 = vmax.f32 %v704_v25, 0.0  ;;  %v902_v26 = vadd.f32 1.0, %v1454_v19  ;;  %v945_v19 = vld [vmem:[#allocation10 + $0x18] sm:$0xff] }
 0x36f   :  { %v1357_v28 = vpop.f32.mrf.mxu0 }
 0x370   :  { %v727_v29 = vmax.f32 %v699_v27, 0.0  ;;  %v714_v30 = vadd.f32 %v1357_v28, %v1088_v23 }
 0x371   :  { %v708_v32 = vpop.f32.mrf.mxu0 }
 0x372   :  { %v709_v33 = vadd.f32 %v1088_v23, %v708_v32  ;;  %1393 = vmatprep.mubr.f32.mxu1 %v727_v29  ;;  %v730_v34 = vmax.f32 %v714_v30, 0.0 }
 0x373   :  { %v1360_v35 = vpop.f32.mrf.mxu0  ;;  %1394 = vmatmul.mubr.f32.vlgmr.msra.gmra.mxu1 %v728_v31 }
 0x374   :  { %v729_v36 = vmax.f32 %v709_v33, 0.0  ;;  %v724_v37 = vadd.f32 %v1360_v35, %v1088_v23 }
 0x375   :  { %v718_v39 = vpop.f32.mrf.mxu0 }
 0x376   :  { %v719_v42 = vadd.f32 %v1088_v23, %v718_v39  ;;  %1396 = vmatprep.mubr.f32.mxu1 %v729_v36  ;;  %v732_v44 = vmax.f32 %v724_v37, 0.0 }
 0x377   :  { %1397 = vmatmul.mubr.f32.gmra.mxu1 %v730_v34 }
 0x378   :  { %v731_v46 = vmax.f32 %v719_v42, 0.0 }
 0x37a   :  { %1399 = vmatprep.mubr.f32.mxu1 %v731_v46 }
 0x37b   :  { %1400 = vmatmul.mubr.f32.gmra.mxu1 %v732_v44 }
 0x433   :  { %v1395_v57 = vpop.f32.mrf.mxu1 }
 0x434   :  { %v828_v58 = vadd.f32 %v1395_v57, %v1089_v54 }
 0x435   :  { %v822_v38 = vpop.f32.mrf.mxu1 }
 0x436   :  { %v852_v41 = vsub.f32 0.0, %v828_v58  ;;  %v823_v40 = vadd.f32 %v1089_v54, %v822_v38 }
 0x437   :  { %v1398_v62 = vpop.f32.mrf.mxu1 }
 0x438   :  { %v859_v63 = vmul.f32 1.442695, %v852_v41  ;;  %v851_v0 = vsub.f32 0.0, %v823_v40  ;;  %v838_v1 = vadd.f32 %v1398_v62, %v1089_v54 }
 0x439   :  { %v832_v45 = vpop.f32.mrf.mxu1 }
 0x43a   :  { %1455 = vpow2.f32 %v859_v63  ;;  %v857_v3 = vmul.f32 1.442695, %v851_v0  ;;  %v854_v4 = vsub.f32 0.0, %v838_v1  ;;  %v833_v5 = vadd.f32 %v1089_v54, %v832_v45 }
 0x43b   :  { %1457 = vpow2.f32 %v891_v61  ;;  %v1401_v6 = vpop.f32.mrf.mxu1 }
 0x43c   :  { %1459 = vpow2.f32 %v857_v3  ;;  %v863_v7 = vmul.f32 1.442695, %v854_v4  ;;  %v853_v8 = vsub.f32 0.0, %v833_v5  ;;  %v848_v9 = vadd.f32 %v1401_v6, %v1089_v54  ;;  %v956_v6 = vld [vmem:[#allocation10 + $0x70] sm:$0xff] }
 0x43d   :  { %1461 = vpow2.f32 %v897_v2  ;;  %v842_v49 = vpop.f32.mrf.mxu1 }
 0x43e   :  { %1463 = vpow2.f32 %v863_v7  ;;  %v861_v10 = vmul.f32 1.442695, %v853_v8  ;;  %v856_v11 = vsub.f32 0.0, %v848_v9  ;;  %v843_v12 = vadd.f32 %v1089_v54, %v842_v49  ;;  %v955_v7 = vld [vmem:[#allocation10 + $0x68] sm:$0xff]  ;;  %v954_v9 = vld [vmem:[#allocation10 + $0x60] sm:$0xff] }
 0x43f   :  { %1465 = vpow2.f32 %v895_v47  ;;  %v957_v47 = vld [vmem:[#allocation10 + $0x78] sm:$0xff] }
 0x440   :  { %1467 = vpow2.f32 %v861_v10  ;;  %v867_v13 = vmul.f32 1.442695, %v856_v11  ;;  %v855_v14 = vsub.f32 0.0, %v843_v12  ;;  %1403 = vmatpush3.msra.mxu0 %v957_v47  ;;  %v953_v10 = vld [vmem:[#allocation10 + $0x58] sm:$0xff]  ;;  %v952_v12 = vld [vmem:[#allocation10 + $0x50] sm:$0xff] }
 0x441   :  { %1404 = vmatprep.subr.mxu0 %v1658_v22 }
 0x442   :  { %1469 = vpow2.f32 %v867_v13  ;;  %v865_v16 = vmul.f32 1.442695, %v855_v14  ;;  %1405 = vmatpush3.msra.mxu0 %v956_v6  ;;  %v951_v13 = vld [vmem:[#allocation10 + $0x48] sm:$0xff]  ;;  %v950_v14 = vld [vmem:[#allocation10 + $0x40] sm:$0xff] }
 0x443   :  { %1406 = vmatprep.subr.mxu0 %v1658_v22 }
 0x444   :  { %1471 = vpow2.f32 %v865_v16  ;;  %1407 = vmatpush3.msra.mxu0 %v955_v7  ;;  %v948_v16 = vld [vmem:[#allocation10 + $0x30] sm:$0xff] }
 0x445   :  { %1473 = vrcp.f32 %v900_v18  ;;  %1408 = vmatprep.subr.mxu0 %v1658_v22  ;;  %v946_v18 = vld [vmem:[#allocation10 + $0x20] sm:$0xff] }
 0x446   :  { %1409 = vmatpush3.msra.mxu0 %v954_v9 }
 0x447   :  { %v1456_v20 = vpop.eup %1455  ;;  %1410 = vmatprep.subr.mxu0 %v1658_v22 }
 0x448   :  { %v1458_v23 = vpop.eup %1457  ;;  %v870_v24 = vadd.f32 1.0, %v1456_v20  ;;  %1411 = vmatpush3.msra.mxu0 %v953_v10  ;;  %v944_v20 = vld [vmem:[#allocation10 + $0x10] sm:$0xff] }
 0x449   :  { %v1460_v25 = vpop.eup %1459  ;;  %v901_v30 = vadd.f32 1.0, %v1458_v23  ;;  %1412 = vmatprep.subr.mxu0 %v1658_v22  ;;  %v942_v23 = vld [vmem:[#allocation10] sm:$0xff] }
 0x44a   :  { %v1462_v27 = vpop.eup %1461  ;;  %1475 = vrcp.f32 %v870_v24  ;;  %v869_v28 = vadd.f32 1.0, %v1460_v25  ;;  %1413 = vmatpush3.msra.mxu0 %v952_v12 }
 0x44b   :  { %v1464_v29 = vpop.eup %1463  ;;  %1477 = vrcp.f32 %v899_v21  ;;  %v904_v34 = vadd.f32 1.0, %v1462_v27  ;;  %1414 = vmatprep.subr.mxu0 %v1658_v22  ;;  %v943_v21 = vld [vmem:[#allocation10 + $0x8] sm:$0xff] }
 0x44c   :  { %v1466_v31 = vpop.eup %1465  ;;  %1479 = vrcp.f32 %v869_v28  ;;  %v872_v32 = vadd.f32 1.0, %v1464_v29  ;;  %1415 = vmatpush3.msra.mxu0 %v951_v13 }
 0x44d   :  { %v1468_v33 = vpop.eup %1467  ;;  %1481 = vrcp.f32 %v902_v26  ;;  %v903_v37 = vadd.f32 1.0, %v1466_v31  ;;  %1416 = vmatprep.subr.mxu0 %v1658_v22 }
 0x44e   :  { %1483 = vrcp.f32 %v872_v32  ;;  %v871_v35 = vadd.f32 1.0, %v1468_v33  ;;  %1417 = vmatpush3.msra.mxu0 %v950_v14 }
 0x44f   :  { %v1470_v36 = vpop.eup %1469  ;;  %1485 = vrcp.f32 %v901_v30  ;;  %1418 = vmatprep.subr.mxu0 %v1658_v22 }
 0x450   :  { %1487 = vrcp.f32 %v871_v35  ;;  %v874_v39 = vadd.f32 1.0, %v1470_v36  ;;  %1419 = vmatpush3.msra.mxu0 %v949_v15 }
 0x451   :  { %v1472_v42 = vpop.eup %1471  ;;  %1489 = vrcp.f32 %v904_v34  ;;  %1420 = vmatprep.subr.mxu0 %v1658_v22 }
 0x452   :  { %1491 = vrcp.f32 %v874_v39  ;;  %v873_v44 = vadd.f32 1.0, %v1472_v42  ;;  %v1474_v46 = vpop.eup %1473  ;;  %1421 = vmatpush3.msra.mxu0 %v948_v16 }
 0x453   :  { %1493 = vrcp.f32 %v903_v37  ;;  %1422 = vmatprep.subr.mxu0 %v1658_v22 }
 0x454   :  { %1495 = vrcp.f32 %v873_v44  ;;  %1423 = vmatpush3.msra.mxu0 %v947_v17 }
 0x455   :  { %1424 = vmatprep.subr.mxu0 %v1658_v22 }
 0x456   :  { %1425 = vmatpush3.msra.mxu0 %v946_v18 }
 0x457   :  { %v1476_v48 = vpop.eup %1475  ;;  %1426 = vmatprep.subr.mxu0 %v1658_v22 }
 0x458   :  { %v1478_v50 = vpop.eup %1477  ;;  %v912_v51 = vmul.f32 %v1476_v48, %v1474_v46  ;;  %1427 = vmatpush3.msra.mxu0 %v945_v19 }
 0x459   :  { %v1480_v52 = vpop.eup %1479  ;;  %1428 = vmatprep.subr.mxu0 %v1658_v22 }
 0x45a   :  { %v1482_v54 = vpop.eup %1481  ;;  %v911_v55 = vmul.f32 %v1480_v52, %v1478_v50  ;;  %1429 = vmatpush3.msra.mxu0 %v944_v20 }
 0x45b   :  { %v1484_v56 = vpop.eup %1483  ;;  %1430 = vmatprep.subr.mxu0 %v1658_v22 }
 0x45c   :  { %v1486_v57 = vpop.eup %1485  ;;  %v919_v58 = vadd.f32 %v918_v53, %v911_v55  ;;  %v914_v59 = vmul.f32 %v1484_v56, %v1482_v54  ;;  %1431 = vmatpush3.msra.mxu0 %v943_v21 }
 0x45d   :  { %v1488_v60 = vpop.eup %1487  ;;  %1432 = vmatprep.subr.mxu0 %v1658_v22 }
 0x45e   :  { %v1490_v38 = vpop.eup %1489  ;;  %v920_v41 = vmax.f32 %v919_v58, 0.0  ;;  %v913_v40 = vmul.f32 %v1488_v60, %v1486_v57  ;;  %1433 = vmatpush3.msra.mxu0 %v942_v23 }
 0x45f   :  { %v1492_v61 = vpop.eup %1491 }
 0x460   :  { %v1494_v43 = vpop.eup %1493  ;;  %921 = vrot.lane.b32.xlu0 %v920_v41, %s1659_s8  ;;  %v1868_v62 = vmul.f32 %v1492_v61, %v1490_v38 }
 0x461   :  { %v1496_v63 = vpop.eup %1495 }
 0x462   :  { %v1870_v0 = vmul.f32 %v1496_v63, %v1494_v43 }
 0x4d2   :  { %v922_v1 = vpop.permute.xlu0 %921 }
 0x4d3   :  { %v923_v2 = vadd.f32 %v922_v1, %v912_v51 }
 0x4d5   :  { %v924_v45 = vmax.f32 %v923_v2, 0.0 }
 0x4d7   :  { %925 = vrot.lane.b32.xlu1 %v924_v45, %s1659_s8 }
 0x549   :  { %v926_v3 = vpop.permute.xlu1 %925 }
 0x54a   :  { %v927_v4 = vadd.f32 %v926_v3, %v913_v40 }
 0x54c   :  { %v928_v5 = vmax.f32 %v927_v4, 0.0 }
 0x54e   :  { %929 = vrot.lane.b32.xlu1 %v928_v5, %s1659_s8 }
 0x5c0   :  { %v930_v8 = vpop.permute.xlu1 %929 }
 0x5c1   :  { %v931_v49 = vadd.f32 %v930_v8, %v914_v59 }
 0x5c3   :  { %v932_v11 = vmax.f32 %v931_v49, 0.0 }
 0x5c5   :  { %933 = vrot.lane.b32.xlu0 %v932_v11, %s1659_s8 }
 0x637   :  { %v934_v24 = vpop.permute.xlu0 %933 }
 0x638   :  { %v935_v25 = vadd.f32 %v934_v24, %v1870_v0 }
 0x63a   :  { %v936_v26 = vmax.f32 %v935_v25, 0.0 }
 0x63c   :  { %937 = vrot.lane.b32.xlu1 %v936_v26, %s1659_s8 }
 0x6ae   :  { %v938_v27 = vpop.permute.xlu1 %937 }
 0x6af   :  { %v939_v28 = vadd.f32 %v938_v27, %v1868_v62 }
 0x6b1   :  { %v940_v29 = vmax.f32 %v939_v28, 0.0 }
 0x6b3   :  { %941 = vst [vmem:[#allocation12] sm:$0xff] %v940_v29  ;;  %1435 = vmatmul.mubr.f32.vlgmr.msra.gmra.mxu0 %v940_v29 }
 0x6b4   :  { %1612 = shalt.err (!%p1609_p1)
}
 0x6b5   :  { %1060 = dma.vmem_to_hbm [thread:$0]  %s1058_s13, 128, %s1919_s16, [#allocation13]   ;;  %v1090_v22 = vld [vmem:[%s1917_s14] ss:$0 sm:$0xff] }
 0x6b6   :  { %s1662_s1 = smov [#allocation11]  }
 0x6b7   :  { %s1047_s24 = sshll.u32 %s1662_s1, 4  ;;  %s1048_s24 = int_to_ptr.vmem [resolvable:$true] %s1047_s24 }
 0x6b8   :  { %s1621_s25 = scalar_lea.vmem %s1048_s24, 128  ;;  %p1626_p3 = scmp.lt.s32.totalorder %s1048_s24, %s1048_s24 }
 0x6b9   :  { %p1622_p2 = scmp.ne.s32.totalorder %s1048_s24, %s1621_s25  ;;  %p1627_p4 = scmp.lt.s32.totalorder %s1621_s25, %s1621_s25 }
 0x6bb   :  { %p1628_p5 = por %p1627_p4, %p1626_p3 }
 0x6bd   :  { %p1629_p6 = pnand %p1628_p5, %p1622_p2 }
 0x773   :  { %v1031_v30 = vpop.f32.mrf.mxu0 }
 0x774   :  { %v1032_v31 = vadd.f32 %v1090_v22, %v1031_v30 }
 0x775   :  { %v1436_v32 = vpop.f32.mrf.mxu0 }
 0x776   :  { %v1035_v33 = vsub.f32 0.0, %v1032_v31 }
 0x778   :  { %v1036_v34 = vmul.f32 1.442695, %v1035_v33 }
 0x77a   :  { %1497 = vpow2.f32 %v1036_v34 }
 0x787   :  { %v1498_v35 = vpop.eup %1497 }
 0x788   :  { %v1038_v36 = vadd.f32 1.0, %v1498_v35 }
 0x78a   :  { %1499 = vrcp.f32 %v1038_v36 }
 0x797   :  { %v1500_v37 = vpop.eup %1499 }
 0x798   :  { %1040 = vst [vmem:[#allocation11] sm:$0xff] %v1500_v37 }
 0x799   :  { %1632 = shalt.err (!%p1629_p6)
}
 0x79a   :  { %1050 = dma.vmem_to_hbm [thread:$0]  %s1048_s24, 128, %s1918_s15, [#allocation4]  }
 0x79b   :  { %1647 = dma.done.wait [#allocation4], 128  }
 0x79c   :  { %1648 = vsyncadd [#allocation4], 4294967168 }
 0x79d   :  { %1649 = dma.done.wait [#allocation13], 128  }
 0x79e   :  { %1650 = vsyncadd [#allocation13], 4294967168 }
 0x79f   :  { %1067 = vsyncpa [#allocation3], 1 }
 0x7a0   :  { %1068 = vsyncpa [#allocation6], 1 }
 0x7a1   :  { %1069 = vsyncpa [#allocation9], 1 }
 0x7a2   :  { %1070 = vsyncpa [#allocation4], 1 }
 0x7a3   :  { %1071 = vsyncpa [#allocation13], 1 }

</bundles_post_ra>
